<compile_context>
chip_gen: v7x
topology: tpu7x:2x2x1
jax: 0.10.0
libtpu: 0.0.40
codegen_flags: <defaults>
</compile_context>

<pallas_src>
import functools

import jax
import jax.numpy as jnp
from jax.experimental import pallas as pl
from jax.experimental.pallas import tpu as pltpu


def _round_up(x: int, m: int) -> int:
    return ((x + m - 1) // m) * m


# ----------------------------------------------------------------------------- prologue
def _normalize_kernel(f_ref, fn_ref):
    """Row-wise L2 normalization (torch.nn.functional.normalize, eps=1e-12), done once."""
    f = f_ref[...].astype(jnp.float32)
    norm = jnp.sqrt(jnp.sum(f * f, axis=1, keepdims=True))
    fn_ref[...] = f / jnp.maximum(norm, 1e-12)


# -------------------------------------------------------------------------- main kernel
def _supcon_kernel(fn_ref, fnt_ref, t_col_ref, t_row_ref, loss_ref,
                   acc_exp, acc_pos, acc_npos, *,
                   inv_tau: float, num_pad: int, tile: int, agg_in: bool):
    i = pl.program_id(0)          # row-tile index    ("parallel")
    k = pl.program_id(1)          # column-tile index ("arbitrary", reduction, last)

    @pl.when(k == 0)
    def _init():
        acc_exp[...] = jnp.zeros_like(acc_exp)
        acc_pos[...] = jnp.zeros_like(acc_pos)
        acc_npos[...] = jnp.zeros_like(acc_npos)

    # [T, K] @ [K, T] cosine tile (rows already L2-normalized).
    cos = jax.lax.dot_general(
        fn_ref[...], fnt_ref[...], (((1,), (0,)), ((), ())),
        precision=jax.lax.Precision.HIGHEST,
        preferred_element_type=jnp.float32)
    logits = cos * inv_tau

    # Mask the self-similarity diagonal instead of subtracting exp(1/tau) (robust in f32,
    # exactly equivalent to the module since cdist(x, x) has a zero diagonal).
    row_ids = jax.lax.broadcasted_iota(jnp.int32, (tile, tile), 0) + i * tile
    col_ids = jax.lax.broadcasted_iota(jnp.int32, (tile, tile), 1) + k * tile
    offd = row_ids != col_ids

    # Positive mask: same label, not self.  Padded columns carry an INT32_MIN sentinel
    # label so they never match a real row.
    pos = jnp.logical_and(t_col_ref[...] == t_row_ref[...], offd).astype(jnp.float32)

    e_nd = jnp.where(offd, jnp.exp(logits), 0.0)

    acc_exp[...] += jnp.sum(e_nd, axis=1, keepdims=True)
    acc_npos[...] += jnp.sum(pos, axis=1, keepdims=True)
    if agg_in:
        acc_pos[...] += jnp.sum(e_nd * pos, axis=1, keepdims=True)
    else:
        acc_pos[...] += jnp.sum(logits * pos, axis=1, keepdims=True)

    @pl.when(k == pl.num_programs(1) - 1)
    def _finalize():
        n_pos = acc_npos[...]
        # Each padded (all-zero) column contributed exp(0) = 1: remove them with a static
        # scalar instead of a full [T, T] validity-mask multiply.
        neg_loss = jnp.log(acc_exp[...] - float(num_pad))
        if agg_in:
            pos_loss = jnp.log(acc_pos[...]) - jnp.log(n_pos)
        else:
            pos_loss = acc_pos[...] / n_pos
        # Output is only Bp*4 bytes; lane-sparse [T, 1] store is fine here.
        loss_ref[...] = neg_loss - pos_loss


# -------------------------------------------------------------- cached pallas builders
@functools.lru_cache(maxsize=None)
def _build_normalize(Bp: int, Dp: int, tile: int):
    return pl.pallas_call(
        _normalize_kernel,
        out_shape=jax.ShapeDtypeStruct((Bp, Dp), jnp.float32),
        grid_spec=pltpu.PrefetchScalarGridSpec(
            num_scalar_prefetch=0,
            grid=(Bp // tile,),
            in_specs=[pl.BlockSpec((tile, Dp), lambda i: (i, 0))],
            out_specs=pl.BlockSpec((tile, Dp), lambda i: (i, 0)),
        ),
        compiler_params=pltpu.CompilerParams(dimension_semantics=("parallel",)),
    )


@functools.lru_cache(maxsize=None)
def _build_supcon(Bp: int, Dp: int, tile: int, num_pad: int,
                  inv_tau: float, agg_in: bool):
    kernel = functools.partial(
        _supcon_kernel, inv_tau=inv_tau, num_pad=num_pad, tile=tile, agg_in=agg_in)
    return pl.pallas_call(
        kernel,
        out_shape=jax.ShapeDtypeStruct((Bp, 1), jnp.float32),
        grid_spec=pltpu.PrefetchScalarGridSpec(
            num_scalar_prefetch=0,
            grid=(Bp // tile, Bp // tile),
            in_specs=[
                pl.BlockSpec((tile, Dp), lambda i, k: (i, 0)),   # fn   row tile  [T, K]
                pl.BlockSpec((Dp, tile), lambda i, k: (0, k)),   # fn^T col tile  [K, T]
                pl.BlockSpec((tile, 1), lambda i, k: (i, 0)),    # row labels
                pl.BlockSpec((1, tile), lambda i, k: (0, k)),    # column labels
            ],
            out_specs=pl.BlockSpec((tile, 1), lambda i, k: (i, 0)),
            scratch_shapes=[pltpu.VMEM((tile, 1), jnp.float32)] * 3,
        ),
        compiler_params=pltpu.CompilerParams(
            dimension_semantics=("parallel", "arbitrary")),
    )


# ------------------------------------------------------------------------------ wrapper
def supervised_contrastive_loss(features, targets, *, tau: float,
                                reduction: str = "mean",
                                pos_aggregation: str = "in"):
    if reduction not in ("none", "mean", "sum"):
        raise ValueError(f"Reduction should be: mean, sum, none. But got - {reduction}!")
    if pos_aggregation not in ("in", "out"):
        raise ValueError(
            f"Positive aggregation should be: in or out. But got - {pos_aggregation}!")
    # TODO(synk): the module's runtime assert "at least one positive per sample" is
    # data-dependent and has no clean Pallas/JAX equivalent (would need checkify).

    bs, d = features.shape
    Bp = _round_up(max(bs, 8), 128)
    Dp = _round_up(max(d, 1), 128)
    tile = 256 if Bp % 256 == 0 else 128     # 256-aligned tiles when possible (v6e/v7x MXU)
    num_pad = Bp - bs

    # Pad once in the input dtype (cast to f32 happens inside the prologue kernel).
    f_pad = jnp.zeros((Bp, Dp), features.dtype).at[:bs, :d].set(features)
    t_pad = jnp.full((Bp,), jnp.iinfo(jnp.int32).min, jnp.int32).at[:bs].set(
        targets.astype(jnp.int32))
    t_col = t_pad.reshape(Bp, 1)
    t_row = t_pad.reshape(1, Bp)

    # Prologue: normalize every row exactly once (not once per column tile).
    fn = _build_normalize(Bp, Dp, tile)(f_pad)

    # One-time transpose so the main kernel streams canonical [M,K] @ [K,N] MXU tiles.
    fn_t = jnp.swapaxes(fn, 0, 1)

    per_row = _build_supcon(Bp, Dp, tile, num_pad, 1.0 / tau,
                            pos_aggregation == "in")(fn, fn_t, t_col, t_row)

    loss = per_row[:bs, 0]
    if reduction == "mean":
        loss = loss.mean()
    elif reduction == "sum":
        loss = loss.sum()
    return loss


# ---------------------------------------------------------------------------- reference
def _reference_loss(features, targets, *, tau, reduction="mean", pos_aggregation="in"):
    """Pure-JAX reference mirroring catalyst's SupervisedContrastiveLoss.forward.

    cdist(x, x) has an exactly-zero diagonal, so the module's "- e**(1/tau)" / "- 1/tau"
    corrections remove exactly the self-similarity (diagonal) terms; the diagonal-masked
    form below is the well-conditioned f32 equivalent.
    """
    fn = features / jnp.maximum(jnp.linalg.norm(features, axis=1, keepdims=True), 1e-12)
    cos = jnp.matmul(fn, fn.T, precision=jax.lax.Precision.HIGHEST)
    logits = cos / tau
    n = features.shape[0]
    offd = ~jnp.eye(n, dtype=bool)
    pos = (targets[None, :] == targets[:, None]) & offd
    n_pos = pos.sum(axis=1).astype(jnp.float32)
    e_nd = jnp.where(offd, jnp.exp(logits), 0.0)
    if pos_aggregation == "in":
        pos_loss = jnp.log((e_nd * pos).sum(axis=1)) - jnp.log(n_pos)
    else:
        pos_loss = (logits * pos).sum(axis=1) / n_pos
    neg_loss = jnp.log(e_nd.sum(axis=1))
    loss = -pos_loss + neg_loss
    if reduction == "mean":
        return loss.mean()
    if reduction == "sum":
        return loss.sum()
    return loss


if __name__ == "__main__":
    key = jax.random.PRNGKey(0)
    bs, feature_len = 16, 64
    tau = 0.1

    features = jax.random.normal(key, (bs, feature_len), dtype=jnp.float32)
    # 4 classes x 4 samples: every sample has >= 1 positive (the module's assertion).
    targets = jnp.arange(bs, dtype=jnp.int32) // 4

    ok = True
    for pos_agg in ("in", "out"):
        # Kernel runs once per aggregation mode (reduction "none"); mean/sum reductions
        # are applied on the tiny per-row vector and checked against the reference too.
        out_none = jax.block_until_ready(supervised_contrastive_loss(
            features, targets, tau=tau, reduction="none", pos_aggregation=pos_agg))
        ref_none = _reference_loss(
            features, targets, tau=tau, reduction="none", pos_aggregation=pos_agg)
        if not bool(jnp.allclose(out_none, ref_none, rtol=2e-3, atol=2e-3)):
            ok = False
        for red, fn_red in (("mean", jnp.mean), ("sum", jnp.sum)):
            ref_r = _reference_loss(
                features, targets, tau=tau, reduction=red, pos_aggregation=pos_agg)
            if not bool(jnp.allclose(fn_red(out_none), ref_r, rtol=2e-3, atol=2e-3)):
                ok = False

    print("KERNEL_OK" if ok else "KERNEL_MISMATCH")
</pallas_src>

<mosaic_0001>
module attributes {stable_mosaic.version = 11 : i64} {
  func.func @_normalize_kernel(%arg0: i32, %arg1: memref<128x128xf32, #tpu.memory_space<vmem>>, %arg2: memref<128x128xf32, #tpu.memory_space<vmem>>) attributes {dimension_semantics = [#tpu.dimension_semantics<parallel>], iteration_bounds = array<i64: 1>, scalar_prefetch = 0 : i64, scratch_operands = 0 : i64, tpu.core_type = #tpu.core_type<tc>, window_params = [{transform_indices = @transform_0, window_bounds = array<i64: 128, 128>}, {transform_indices = @transform_1, window_bounds = array<i64: 128, 128>}]} {
    %c0 = arith.constant 0 : index
    %c0_0 = arith.constant 0 : index
    %0 = vector.load %arg1[%c0, %c0_0] : memref<128x128xf32, #tpu.memory_space<vmem>>, vector<128x128xf32>
    %1 = arith.mulf %0, %0 : vector<128x128xf32>
    %cst = arith.constant dense<0.000000e+00> : vector<128xf32>
    %2 = vector.multi_reduction <add>, %1, %cst [1] : vector<128x128xf32> to vector<128xf32>
    %3 = vector.shape_cast %2 : vector<128xf32> to vector<128x1xf32>
    %4 = math.sqrt %3 : vector<128x1xf32>
    %cst_1 = arith.constant 9.99999996E-13 : f32
    %5 = vector.broadcast %cst_1 : f32 to vector<128x1xf32>
    %6 = arith.maximumf %4, %5 : vector<128x1xf32>
    %7 = vector.broadcast %6 : vector<128x1xf32> to vector<128x128xf32>
    %8 = arith.divf %0, %7 : vector<128x128xf32>
    %c0_2 = arith.constant 0 : index
    %c0_3 = arith.constant 0 : index
    %9 = vector.load %arg2[%c0_2, %c0_3] : memref<128x128xf32, #tpu.memory_space<vmem>>, vector<128x128xf32>
    tpu.vector_store %arg2[%c0_2, %c0_3], %8 {strides = array<i32>} : memref<128x128xf32, #tpu.memory_space<vmem>>, vector<128x128xf32>,
    return
  }
  func.func @transform_0(%arg0: i32) -> (i32, i32) {
    %c0_i32 = arith.constant 0 : i32
    %c0_i32_0 = arith.constant 0 : i32
    return %arg0, %c0_i32 : i32, i32
  }
  func.func @transform_1(%arg0: i32) -> (i32, i32) {
    %c0_i32 = arith.constant 0 : i32
    %c0_i32_0 = arith.constant 0 : i32
    return %arg0, %c0_i32 : i32, i32
  }
}

</mosaic_0001>

<bundles_post_ra>
// kernel: tpu_custom_call.1
= control target key start
LH: loop header
LB: loop body
LE: loop exit
PB: predicated region body
PF: predicated region fallthrough
CT: control target
= control target key end

     0   :  { %6 = vsyncpa [#allocation3], 0  ;;  %s628_s0 = inlined_call_operand.hbm [shape: f32[128,128], index: 0, kind: input, shape index: {}]   ;;  %s629_s1 = inlined_call_operand.hbm [shape: f32[128,128], index: 1, kind: output, shape index: {}]  }
   0x1   :  { %7 = vsyncpa [#allocation4], 0  ;;  %s396_s6 = smov [#allocation2]   ;;  %s348_s10 = scalar_lea.hbm %s628_s0, 2048 }
   0x2   :  { %s13_s7 = sshll.u32 %s396_s6, 4  ;;  %p349_p0 = scmp.ne.s32.totalorder %s628_s0, %s348_s10  ;;  %s14_s7 = int_to_ptr.vmem [resolvable:$true] %s13_s7 }
   0x3   :  { %p352_p1 = scmp.lt.u32.totalorder %s348_s10, %s628_s0 }
   0x5   :  { %p354_p2 = pnand %p352_p1, %p349_p0 }
   0x7   :  { %357 = shalt.err (!%p354_p2)
}
   0x8   :  { %s358_s15 = scalar_lea.vmem %s14_s7, 2048  ;;  %p363_p4 = scmp.lt.s32.totalorder %s14_s7, %s14_s7 }
   0x9   :  { %p359_p3 = scmp.ne.s32.totalorder %s14_s7, %s358_s15  ;;  %p364_p5 = scmp.lt.s32.totalorder %s358_s15, %s358_s15 }
   0xb   :  { %p365_p6 = por %p364_p5, %p363_p4 }
   0xd   :  { %p366_p7 = pnand %p365_p6, %p359_p3 }
   0xf   :  { %369 = shalt.err (!%p366_p7)
}
  0x10   :  { %s397_s16 = smov 128   ;;  %s398_s17 = smov 8  }
  0x11   :  { %19 = dma.hbm_to_vmem [thread:$0]  %s628_s0, 2048, %s14_s7, [#allocation3], %s397_s16, %s397_s16, %s398_s17  }
  0x12   :  { %392 = dma.done.wait [#allocation3], 2048  }
  0x13   :  { %393 = vsyncadd [#allocation3], 4294965248  ;;  %v425_v0 = vld [vmem:[#allocation2 + $0x10] sm:$0xff]  ;;  %v427_v1 = vld [vmem:[#allocation2] sm:$0xff]  ;;  %s399_s0 = smov [#allocation5]  }
  0x14   :  { %v429_v2 = vld [vmem:[#allocation2 + $0x18] sm:$0xff]  ;;  %v41_v3 = vmul.f32 %v425_v0, %v425_v0  ;;  %v39_v4 = vmul.f32 %v427_v1, %v427_v1  ;;  %v435_v5 = vld [vmem:[#allocation2 + $0x8] sm:$0xff]  ;;  %v443_v9 = vld [vmem:[#allocation2 + $0x20] sm:$0xff]  ;;  %s268_s20 = sshll.u32 %s399_s0, 4  ;;  %s269_s20 = int_to_ptr.vmem [resolvable:$true] %s268_s20 }
  0x15   :  { %v42_v6 = vmul.f32 %v429_v2, %v429_v2  ;;  %v40_v7 = vmul.f32 %v435_v5, %v435_v5  ;;  %v441_v8 = vld [vmem:[#allocation2 + $0x28] sm:$0xff]  ;;  %v43_v11 = vmul.f32 %v443_v9, %v443_v9  ;;  %v449_v12 = vld [vmem:[#allocation2 + $0x38] sm:$0xff]  ;;  %v451_v13 = vld [vmem:[#allocation2 + $0x30] sm:$0xff]  ;;  %s370_s21 = scalar_lea.vmem %s269_s20, 2048  ;;  %p375_p9 = scmp.lt.s32.totalorder %s269_s20, %s269_s20 }
  0x16   :  { %59 = vadd.xlane.f32.xlu1 %v41_v3  ;;  %55 = vadd.xlane.f32.xlu0 %v39_v4  ;;  %v44_v10 = vmul.f32 %v441_v8, %v441_v8  ;;  %v46_v14 = vmul.f32 %v449_v12, %v449_v12  ;;  %v45_v15 = vmul.f32 %v451_v13, %v451_v13  ;;  %v457_v16 = vld [vmem:[#allocation2 + $0x48] sm:$0xff]  ;;  %v459_v17 = vld [vmem:[#allocation2 + $0x40] sm:$0xff]  ;;  %v465_v20 = vld [vmem:[#allocation2 + $0x58] sm:$0xff]  ;;  %p371_p8 = scmp.ne.s32.totalorder %s269_s20, %s370_s21  ;;  %p376_p10 = scmp.lt.s32.totalorder %s370_s21, %s370_s21 }
  0x17   :  { %v48_v18 = vmul.f32 %v457_v16, %v457_v16  ;;  %v47_v19 = vmul.f32 %v459_v17, %v459_v17  ;;  %v467_v21 = vld [vmem:[#allocation2 + $0x50] sm:$0xff]  ;;  %v50_v22 = vmul.f32 %v465_v20, %v465_v20  ;;  %v473_v24 = vld [vmem:[#allocation2 + $0x68] sm:$0xff]  ;;  %v475_v25 = vld [vmem:[#allocation2 + $0x60] sm:$0xff] }
  0x18   :  { %v49_v23 = vmul.f32 %v467_v21, %v467_v21  ;;  %v52_v26 = vmul.f32 %v473_v24, %v473_v24  ;;  %v51_v27 = vmul.f32 %v475_v25, %v475_v25  ;;  %v481_v28 = vld [vmem:[#allocation2 + $0x78] sm:$0xff]  ;;  %v483_v29 = vld [vmem:[#allocation2 + $0x70] sm:$0xff]  ;;  %p377_p11 = por %p376_p10, %p375_p9 }
  0x19   :  { %v54_v30 = vmul.f32 %v481_v28, %v481_v28  ;;  %v53_v31 = vmul.f32 %v483_v29, %v483_v29 }
  0x1a   :  { %61 = vadd.xlane.f32.xlu1 %v42_v6  ;;  %57 = vadd.xlane.f32.xlu0 %v40_v7  ;;  %p378_p12 = pnand %p377_p11, %p371_p8 }
  0x1e   :  { %65 = vadd.xlane.f32.xlu1 %v44_v10  ;;  %63 = vadd.xlane.f32.xlu0 %v43_v11 }
  0x22   :  { %69 = vadd.xlane.f32.xlu1 %v46_v14  ;;  %67 = vadd.xlane.f32.xlu0 %v45_v15 }
  0x26   :  { %73 = vadd.xlane.f32.xlu1 %v48_v18  ;;  %71 = vadd.xlane.f32.xlu0 %v47_v19 }
  0x2a   :  { %77 = vadd.xlane.f32.xlu1 %v50_v22  ;;  %75 = vadd.xlane.f32.xlu0 %v49_v23 }
  0x2e   :  { %81 = vadd.xlane.f32.xlu1 %v52_v26  ;;  %79 = vadd.xlane.f32.xlu0 %v51_v27 }
  0x32   :  { %85 = vadd.xlane.f32.xlu1 %v54_v30  ;;  %83 = vadd.xlane.f32.xlu0 %v53_v31 }
  0xa3   :  { %v60_v32 = vpop.xlane.xlu1 %59  ;;  %v56_v33 = vpop.xlane.xlu0 %55 }
  0xa4   :  { %284 = vrsqrt.f32 %v60_v32  ;;  %vm103_vm0 = vcmp.eq.f32.partialorder %v60_v32, inf  ;;  %vm105_vm1 = vcmp.eq.f32.partialorder %v60_v32, 0.0  ;;  %v106_v41 = vand.u32 2147483648, %v60_v32 }
  0xa5   :  { %286 = vrsqrt.f32 %v56_v33  ;;  %vm89_vm2 = vcmp.eq.f32.partialorder %v56_v33, inf  ;;  %vm91_vm3 = vcmp.eq.f32.partialorder %v56_v33, 0.0  ;;  %v92_v45 = vand.u32 2147483648, %v56_v33 }
  0xa7   :  { %v62_v34 = vpop.xlane.xlu1 %61  ;;  %v58_v35 = vpop.xlane.xlu0 %57 }
  0xa8   :  { %288 = vrsqrt.f32 %v62_v34  ;;  %vm110_vm4 = vcmp.eq.f32.partialorder %v62_v34, inf  ;;  %vm112_vm5 = vcmp.eq.f32.partialorder %v62_v34, 0.0  ;;  %v113_v50 = vand.u32 2147483648, %v62_v34 }
  0xa9   :  { %290 = vrsqrt.f32 %v58_v35  ;;  %vm96_vm6 = vcmp.eq.f32.partialorder %v58_v35, inf  ;;  %vm98_vm7 = vcmp.eq.f32.partialorder %v58_v35, 0.0  ;;  %v99_v59 = vand.u32 2147483648, %v58_v35 }
  0xab   :  { %v489_v36 = vpop.xlane.xlu1 %65  ;;  %v491_v37 = vpop.xlane.xlu0 %63 }
  0xac   :  { %292 = vrsqrt.f32 %v489_v36  ;;  %vm124_vm8 = vcmp.eq.f32.partialorder %v489_v36, inf  ;;  %vm126_vm9 = vcmp.eq.f32.partialorder %v489_v36, 0.0  ;;  %v127_v3 = vand.u32 2147483648, %v489_v36 }
  0xad   :  { %294 = vrsqrt.f32 %v491_v37  ;;  %vm117_vm10 = vcmp.eq.f32.partialorder %v491_v37, inf  ;;  %vm119_vm11 = vcmp.eq.f32.partialorder %v491_v37, 0.0  ;;  %v120_v22 = vand.u32 2147483648, %v491_v37 }
  0xae   :  { %v285_v38 = vpop.eup %284 }
  0xaf   :  { %v287_v39 = vpop.eup %286  ;;  %v102_v40 = vmul.f32 %v285_v38, %v60_v32  ;;  %v495_v42 = vpop.xlane.xlu1 %69 }
  0xb0   :  { %v497_v43 = vpop.xlane.xlu0 %67  ;;  %v88_v44 = vmul.f32 %v287_v39, %v56_v33  ;;  %296 = vrsqrt.f32 %v495_v42  ;;  %vm138_vm12 = vcmp.eq.f32.partialorder %v495_v42, inf  ;;  %vm140_vm13 = vcmp.eq.f32.partialorder %v495_v42, 0.0 }
  0xb1   :  { %v104_v46 = vsel %vm103_vm0, %v60_v32, %v102_v40  ;;  %298 = vrsqrt.f32 %v497_v43  ;;  %v141_v38 = vand.u32 2147483648, %v495_v42  ;;  %vm131_vm14 = vcmp.eq.f32.partialorder %v497_v43, inf }
  0xb2   :  { %v289_v47 = vpop.eup %288  ;;  %v107_v48 = vsel %vm105_vm1, %v106_v41, %v104_v46  ;;  %v90_v49 = vsel %vm89_vm2, %v56_v33, %v88_v44  ;;  %vm133_vm15 = vcmp.eq.f32.partialorder %v497_v43, 0.0 }
  0xb3   :  { %v291_v51 = vpop.eup %290  ;;  %v201_v52 = vmax.f32 %v107_v48, 1e-12  ;;  %v93_v53 = vsel %vm91_vm3, %v92_v45, %v90_v49  ;;  %v109_v54 = vmul.f32 %v289_v47, %v62_v34  ;;  %v501_v55 = vpop.xlane.xlu1 %73 }
  0xb4   :  { %v503_v56 = vpop.xlane.xlu0 %71  ;;  %v199_v57 = vmax.f32 %v93_v53, 1e-12  ;;  %v95_v58 = vmul.f32 %v291_v51, %v58_v35  ;;  %300 = vrsqrt.f32 %v501_v55  ;;  %vm152_vm0 = vcmp.eq.f32.partialorder %v501_v55, inf }
  0xb5   :  { %302 = vrcp.f32 %v201_v52  ;;  %v111_v60 = vsel %vm110_vm4, %v62_v34, %v109_v54  ;;  %vm154_vm1 = vcmp.eq.f32.partialorder %v501_v55, 0.0  ;;  %vm145_vm2 = vcmp.eq.f32.partialorder %v503_v56, inf }
  0xb6   :  { %v293_v61 = vpop.eup %292  ;;  %304 = vrcp.f32 %v199_v57  ;;  %v114_v62 = vsel %vm112_vm5, %v113_v50, %v111_v60  ;;  %v97_v63 = vsel %vm96_vm6, %v58_v35, %v95_v58  ;;  %vm147_vm3 = vcmp.eq.f32.partialorder %v503_v56, 0.0 }
  0xb7   :  { %v295_v4 = vpop.eup %294  ;;  %v202_v6 = vmax.f32 %v114_v62, 1e-12  ;;  %v100_v7 = vsel %vm98_vm7, %v99_v59, %v97_v63  ;;  %v123_v10 = vmul.f32 %v293_v61, %v489_v36  ;;  %306 = vrsqrt.f32 %v503_v56  ;;  %v515_v11 = vpop.xlane.xlu1 %77 }
  0xb8   :  { %v517_v14 = vpop.xlane.xlu0 %75  ;;  %v200_v15 = vmax.f32 %v100_v7, 1e-12  ;;  %v116_v18 = vmul.f32 %v295_v4, %v491_v37  ;;  %v148_v61 = vand.u32 2147483648, %v503_v56  ;;  %vm166_vm4 = vcmp.eq.f32.partialorder %v515_v11, inf }
  0xb9   :  { %308 = vrcp.f32 %v202_v6  ;;  %v125_v19 = vsel %vm124_vm8, %v489_v36, %v123_v10  ;;  %vm168_vm5 = vcmp.eq.f32.partialorder %v515_v11, 0.0  ;;  %vm159_vm6 = vcmp.eq.f32.partialorder %v517_v14, inf }
  0xba   :  { %v297_v23 = vpop.eup %296  ;;  %310 = vrcp.f32 %v200_v15  ;;  %v128_v26 = vsel %vm126_vm9, %v127_v3, %v125_v19  ;;  %v118_v27 = vsel %vm117_vm10, %v491_v37, %v116_v18  ;;  %v134_v37 = vand.u32 2147483648, %v497_v43 }
  0xbb   :  { %v299_v30 = vpop.eup %298  ;;  %v204_v31 = vmax.f32 %v128_v26, 1e-12  ;;  %v121_v32 = vsel %vm119_vm11, %v120_v22, %v118_v27  ;;  %v137_v33 = vmul.f32 %v297_v23, %v495_v42  ;;  %312 = vrsqrt.f32 %v515_v11  ;;  %v533_v34 = vpop.xlane.xlu1 %81 }
  0xbc   :  { %v203_v35 = vmax.f32 %v121_v32, 1e-12  ;;  %v130_v39 = vmul.f32 %v299_v30, %v497_v43  ;;  %314 = vrsqrt.f32 %v517_v14  ;;  %v543_v40 = vpop.xlane.xlu0 %79  ;;  %v162_v23 = vand.u32 2147483648, %v517_v14 }
  0xbd   :  { %316 = vrcp.f32 %v204_v31  ;;  %v139_v36 = vsel %vm138_vm12, %v495_v42, %v137_v33  ;;  %v155_v42 = vand.u32 2147483648, %v501_v55  ;;  %vm161_vm7 = vcmp.eq.f32.partialorder %v517_v14, 0.0 }
  0xbe   :  { %v301_v41 = vpop.eup %300  ;;  %318 = vrcp.f32 %v203_v35  ;;  %v142_v44 = vsel %vm140_vm13, %v141_v38, %v139_v36  ;;  %v132_v45 = vsel %vm131_vm14, %v497_v43, %v130_v39  ;;  %vm180_vm8 = vcmp.eq.f32.partialorder %v533_v34, inf }
  0xbf   :  { %v303_v46 = vpop.eup %302  ;;  %v206_v47 = vmax.f32 %v142_v44, 1e-12  ;;  %v135_v48 = vsel %vm133_vm15, %v134_v37, %v132_v45  ;;  %v151_v49 = vmul.f32 %v301_v41, %v501_v55  ;;  %320 = vrsqrt.f32 %v533_v34  ;;  %v557_v57 = vpop.xlane.xlu1 %85 }
  0xc0   :  { %v305_v50 = vpop.eup %304  ;;  %v220_v51 = vmul.f32 %v303_v46, %v425_v0  ;;  %v205_v52 = vmax.f32 %v135_v48, 1e-12  ;;  %vm182_vm9 = vcmp.eq.f32.partialorder %v533_v34, 0.0  ;;  %vm173_vm10 = vcmp.eq.f32.partialorder %v543_v40, inf }
  0xc1   :  { %v307_v53 = vpop.eup %306  ;;  %v216_v54 = vmul.f32 %v305_v50, %v427_v1  ;;  %322 = vrcp.f32 %v206_v47  ;;  %v153_v43 = vsel %vm152_vm0, %v501_v55, %v151_v49  ;;  %v563_v1 = vpop.xlane.xlu0 %83  ;;  %vm175_vm11 = vcmp.eq.f32.partialorder %v543_v40, 0.0 }
  0xc2   :  { %249 = vst [vmem:[#allocation5 + $0x10] sm:$0xff] %v220_v51  ;;  %324 = vrcp.f32 %v205_v52  ;;  %v156_v58 = vsel %vm154_vm1, %v155_v42, %v153_v43  ;;  %v144_v0 = vmul.f32 %v307_v53, %v503_v56  ;;  %vm194_vm12 = vcmp.eq.f32.partialorder %v557_v57, inf }
  0xc3   :  { %v309_v59 = vpop.eup %308  ;;  %247 = vst [vmem:[#allocation5] sm:$0xff] %v216_v54  ;;  %v208_v60 = vmax.f32 %v156_v58, 1e-12  ;;  %326 = vrsqrt.f32 %v543_v40  ;;  %v197_v50 = vand.u32 2147483648, %v557_v57  ;;  %vm196_vm13 = vcmp.eq.f32.partialorder %v557_v57, 0.0 }
  0xc4   :  { %v311_v62 = vpop.eup %310  ;;  %v222_v55 = vmul.f32 %v309_v59, %v429_v2  ;;  %v146_v63 = vsel %vm145_vm2, %v503_v56, %v144_v0  ;;  %328 = vrsqrt.f32 %v557_v57  ;;  %v169_v56 = vand.u32 2147483648, %v515_v11 }
  0xc5   :  { %v313_v3 = vpop.eup %312  ;;  %v218_v4 = vmul.f32 %v311_v62, %v435_v5  ;;  %330 = vrcp.f32 %v208_v60  ;;  %v149_v6 = vsel %vm147_vm3, %v148_v61, %v146_v63  ;;  %vm187_vm14 = vcmp.eq.f32.partialorder %v563_v1, inf }
  0xc6   :  { %v315_v7 = vpop.eup %314  ;;  %250 = vst [vmem:[#allocation5 + $0x18] sm:$0xff] %v222_v55  ;;  %v207_v10 = vmax.f32 %v149_v6, 1e-12  ;;  %v165_v15 = vmul.f32 %v313_v3, %v515_v11  ;;  %332 = vrsqrt.f32 %v563_v1  ;;  %vm189_vm15 = vcmp.eq.f32.partialorder %v563_v1, 0.0 }
  0xc7   :  { %v317_v2 = vpop.eup %316  ;;  %248 = vst [vmem:[#allocation5 + $0x8] sm:$0xff] %v218_v4  ;;  %v158_v18 = vmul.f32 %v315_v7, %v517_v14 }
  0xc8   :  { %v319_v5 = vpop.eup %318  ;;  %v226_v19 = vmul.f32 %v317_v2, %v441_v8  ;;  %334 = vrcp.f32 %v207_v10  ;;  %v167_v22 = vsel %vm166_vm4, %v515_v11, %v165_v15  ;;  %v183_v11 = vand.u32 2147483648, %v533_v34 }
  0xc9   :  { %v321_v26 = vpop.eup %320  ;;  %v224_v27 = vmul.f32 %v319_v5, %v443_v9  ;;  %v170_v30 = vsel %vm168_vm5, %v169_v56, %v167_v22  ;;  %v160_v31 = vsel %vm159_vm6, %v517_v14, %v158_v18 }
  0xca   :  { %252 = vst [vmem:[#allocation5 + $0x28] sm:$0xff] %v226_v19  ;;  %v210_v32 = vmax.f32 %v170_v30, 1e-12  ;;  %v163_v33 = vsel %vm161_vm7, %v162_v23, %v160_v31  ;;  %v179_v35 = vmul.f32 %v321_v26, %v533_v34 }
  0xcb   :  { %v323_v38 = vpop.eup %322  ;;  %251 = vst [vmem:[#allocation5 + $0x20] sm:$0xff] %v224_v27  ;;  %v209_v8 = vmax.f32 %v163_v33, 1e-12 }
  0xcc   :  { %v325_v39 = vpop.eup %324  ;;  %v230_v9 = vmul.f32 %v323_v38, %v449_v12  ;;  %336 = vrcp.f32 %v210_v32  ;;  %v181_v36 = vsel %vm180_vm8, %v533_v34, %v179_v35  ;;  %v176_v12 = vand.u32 2147483648, %v543_v40 }
  0xcd   :  { %v327_v14 = vpop.eup %326  ;;  %v228_v37 = vmul.f32 %v325_v39, %v451_v13  ;;  %338 = vrcp.f32 %v209_v8  ;;  %v184_v41 = vsel %vm182_vm9, %v183_v11, %v181_v36 }
  0xce   :  { %v329_v44 = vpop.eup %328  ;;  %254 = vst [vmem:[#allocation5 + $0x38] sm:$0xff] %v230_v9  ;;  %v212_v45 = vmax.f32 %v184_v41, 1e-12  ;;  %v172_v46 = vmul.f32 %v327_v14, %v543_v40 }
  0xcf   :  { %v331_v47 = vpop.eup %330  ;;  %253 = vst [vmem:[#allocation5 + $0x30] sm:$0xff] %v228_v37  ;;  %v193_v34 = vmul.f32 %v329_v44, %v557_v57 }
  0xd0   :  { %v333_v13 = vpop.eup %332  ;;  %v234_v48 = vmul.f32 %v331_v47, %v457_v16  ;;  %340 = vrcp.f32 %v212_v45  ;;  %v174_v49 = vsel %vm173_vm10, %v543_v40, %v172_v46  ;;  %v190_v16 = vand.u32 2147483648, %v563_v1 }
  0xd1   :  { %v177_v51 = vsel %vm175_vm11, %v176_v12, %v174_v49  ;;  %v195_v52 = vsel %vm194_vm12, %v557_v57, %v193_v34  ;;  %v186_v42 = vmul.f32 %v333_v13, %v563_v1 }
  0xd2   :  { %v335_v53 = vpop.eup %334  ;;  %256 = vst [vmem:[#allocation5 + $0x48] sm:$0xff] %v234_v48  ;;  %v211_v54 = vmax.f32 %v177_v51, 1e-12  ;;  %v198_v43 = vsel %vm196_vm13, %v197_v50, %v195_v52 }
  0xd3   :  { %v232_v58 = vmul.f32 %v335_v53, %v459_v17  ;;  %v214_v40 = vmax.f32 %v198_v43, 1e-12  ;;  %v188_v0 = vsel %vm187_vm14, %v563_v1, %v186_v42 }
  0xd4   :  { %342 = vrcp.f32 %v211_v54  ;;  %v191_v59 = vsel %vm189_vm15, %v190_v16, %v188_v0 }
  0xd5   :  { %255 = vst [vmem:[#allocation5 + $0x40] sm:$0xff] %v232_v58  ;;  %344 = vrcp.f32 %v214_v40  ;;  %v213_v57 = vmax.f32 %v191_v59, 1e-12 }
  0xd6   :  { %v337_v60 = vpop.eup %336 }
  0xd7   :  { %v339_v61 = vpop.eup %338  ;;  %v238_v62 = vmul.f32 %v337_v60, %v465_v20  ;;  %346 = vrcp.f32 %v213_v57 }
  0xd8   :  { %v236_v55 = vmul.f32 %v339_v61, %v467_v21 }
  0xd9   :  { %258 = vst [vmem:[#allocation5 + $0x58] sm:$0xff] %v238_v62 }
  0xda   :  { %v341_v63 = vpop.eup %340  ;;  %257 = vst [vmem:[#allocation5 + $0x50] sm:$0xff] %v236_v55 }
  0xdb   :  { %v242_v17 = vmul.f32 %v341_v63, %v473_v24 }
  0xdd   :  { %260 = vst [vmem:[#allocation5 + $0x68] sm:$0xff] %v242_v17 }
  0xde   :  { %v343_v3 = vpop.eup %342 }
  0xdf   :  { %v345_v1 = vpop.eup %344  ;;  %v240_v4 = vmul.f32 %v343_v3, %v475_v25 }
  0xe0   :  { %v246_v6 = vmul.f32 %v345_v1, %v481_v28 }
  0xe1   :  { %v347_v7 = vpop.eup %346  ;;  %259 = vst [vmem:[#allocation5 + $0x60] sm:$0xff] %v240_v4 }
  0xe2   :  { %262 = vst [vmem:[#allocation5 + $0x78] sm:$0xff] %v246_v6  ;;  %v244_v20 = vmul.f32 %v347_v7, %v483_v29 }
  0xe4   :  { %261 = vst [vmem:[#allocation5 + $0x70] sm:$0xff] %v244_v20 }
  0xe5   :  { %381 = shalt.err (!%p378_p12)
}
  0xe6   :  { %s382_s24 = scalar_lea.hbm %s629_s1, 2048 }
  0xe7   :  { %p383_p13 = scmp.ne.s32.totalorder %s629_s1, %s382_s24  ;;  %p386_p0 = scmp.lt.u32.totalorder %s382_s24, %s629_s1 }
  0xe9   :  { %p388_p1 = pnand %p386_p0, %p383_p13 }
  0xeb   :  { %391 = shalt.err (!%p388_p1)
}
  0xec   :  { %274 = dma.vmem_to_hbm [thread:$0]  %s269_s20, 2048, %s629_s1, [#allocation4], %s397_s16, %s397_s16, %s398_s17  }
  0xed   :  { %394 = dma.done.wait [#allocation4], 2048  }
  0xee   :  { %395 = vsyncadd [#allocation4], 4294965248 }
  0xef   :  { %278 = vsyncpa [#allocation3], 1 }
  0xf0   :  { %279 = vsyncpa [#allocation4], 1 }

</bundles_post_ra>
